<compile_context>
chip_gen: v5e
topology: v5e:2x2
jax: 0.10.0
libtpu: 0.0.40
codegen_flags: <defaults>
</compile_context>

<pallas_src>
import jax
import jax.numpy as jnp
import numpy as np
from jax.experimental import pallas as pl
from jax.experimental.pallas import tpu as pltpu


def _make_stats_kernel(tm2, rows_valid, need_mask):
    """Pass 1: matmul + bias + ReLU, emit per-block partial column sums / sumsq."""

    def kernel(x_ref, w_ref, b_ref, s_ref, sq_ref):
        y = jnp.dot(x_ref[...], w_ref[...], preferred_element_type=jnp.float32)
        y = jnp.maximum(y + b_ref[...], 0.0)  # bias + ReLU
        if need_mask:
            # mask out zero-padded tail rows so they don't pollute the BN statistics
            row = (jax.lax.broadcasted_iota(jnp.int32, (tm2, 1), 0)
                   + pl.program_id(0) * tm2)
            y = jnp.where(row < rows_valid, y, 0.0)
        s_ref[...] = jnp.sum(y, axis=0, keepdims=True)[None]        # (1, 1, Cout2)
        sq_ref[...] = jnp.sum(y * y, axis=0, keepdims=True)[None]   # (1, 1, Cout2)

    return kernel


def _fused_deconv_bn_kernel(x_ref, w_ref, b_ref, scale_ref, shift_ref, o_ref):
    """Pass 2: recompute matmul + bias + ReLU and apply BN affine; single output write."""
    y = jnp.dot(x_ref[...], w_ref[...], preferred_element_type=jnp.float32)
    y = jnp.maximum(y + b_ref[...], 0.0)
    o_ref[...] = (y * scale_ref[...] + shift_ref[...]).astype(o_ref.dtype)


def deconv_forward(x, wt, b, gamma, beta, *, eps=1e-5, tm_rows=1024,
                   vmem_limit_bytes=64 * 1024 * 1024):
    """x: (N, Ci, H, W) NCHW; wt: (Ci, Co, 2, 2); b/gamma/beta: (Co,).
    Returns (N, Co, 2H, 2W), matching train-mode ConvTranspose2d+ReLU+BatchNorm2d."""
    N, Ci, H, W = x.shape
    Co = wt.shape[1]
    M = N * H * W
    C4 = 4 * Co

    # Lane-densify: pack r original rows per reshaped row so the stored last dim is 128.
    if C4 < 128 and 128 % C4 == 0 and M % (128 // C4) == 0:
        r = 128 // C4
    else:
        r = 1
    M2 = M // r
    Cin2 = r * Ci
    Cout2 = r * C4

    # Tile rows in the reshaped (M2, Cout2) space: big, multiple of 8.
    tm2 = max(8, min(max(tm_rows // r, 8), M2))
    tm2 = ((tm2 + 7) // 8) * 8
    nblk = -(-M2 // tm2)
    M2p = nblk * tm2
    need_mask = (M2p != M2)

    # ---- wrapper-side operand prep (contiguous reshapes only, except the NCHW transpose) ----
    x_flat = x.transpose(0, 2, 3, 1).reshape(M, Ci).astype(jnp.float32)
    x2 = x_flat.reshape(M2, Cin2)                       # free: contiguous row-major reshape
    if need_mask:
        x2 = jnp.pad(x2, ((0, M2p - M2), (0, 0)))

    w_cols = wt.transpose(0, 2, 3, 1).reshape(Ci, C4).astype(jnp.float32)  # (Ci, ki,kj,Co)
    if r > 1:
        # block-diagonal replication so the packed GEMM is exactly r independent copies
        wblk = jnp.kron(jnp.eye(r, dtype=jnp.float32), w_cols)             # (r*Ci, r*C4)
    else:
        wblk = w_cols
    b2 = jnp.tile(b.astype(jnp.float32), 4 * r).reshape(1, Cout2)

    # ---- pass 1: statistics only (no Y written to HBM) ----
    flops_mm = 2 * M2p * Cin2 * Cout2
    cost1 = pl.CostEstimate(
        flops=flops_mm + 4 * M2p * Cout2,
        transcendentals=0,
        bytes_accessed=4 * (M2p * Cin2 + Cin2 * Cout2 + Cout2 + 2 * nblk * Cout2),
    )
    s_part, sq_part = pl.pallas_call(
        _make_stats_kernel(tm2, M2, need_mask),
        out_shape=(
            jax.ShapeDtypeStruct((nblk, 1, Cout2), jnp.float32),
            jax.ShapeDtypeStruct((nblk, 1, Cout2), jnp.float32),
        ),
        grid_spec=pltpu.PrefetchScalarGridSpec(
            num_scalar_prefetch=0,
            grid=(nblk,),
            in_specs=[
                pl.BlockSpec((tm2, Cin2), lambda i: (i, 0)),
                pl.BlockSpec((Cin2, Cout2), lambda i: (0, 0)),
                pl.BlockSpec((1, Cout2), lambda i: (0, 0)),
            ],
            out_specs=[
                pl.BlockSpec((1, 1, Cout2), lambda i: (i, 0, 0)),
                pl.BlockSpec((1, 1, Cout2), lambda i: (i, 0, 0)),
            ],
        ),
        compiler_params=pltpu.CompilerParams(
            dimension_semantics=("parallel",),
            vmem_limit_bytes=vmem_limit_bytes),
        cost_estimate=cost1,
    )(x2, wblk, b2)

    # ---- tiny glue: fold (r packed copies x 4 kernel positions) into per-channel BN stats ----
    count = jnp.float32(M * 4)                                   # elems per channel = N*2H*2W
    ch_sum = s_part.sum(axis=(0, 1)).reshape(r * 4, Co).sum(axis=0)
    ch_sq = sq_part.sum(axis=(0, 1)).reshape(r * 4, Co).sum(axis=0)
    mean = ch_sum / count
    var = ch_sq / count - mean * mean           # biased var (PyTorch train-mode BN), f32
    inv_std = jax.lax.rsqrt(var + eps)
    scale_ch = gamma.astype(jnp.float32) * inv_std
    shift_ch = beta.astype(jnp.float32) - mean * scale_ch
    scale2 = jnp.tile(scale_ch, 4 * r).reshape(1, Cout2)
    shift2 = jnp.tile(shift_ch, 4 * r).reshape(1, Cout2)

    # ---- pass 2: fused recompute + BN affine, single lane-dense output write ----
    cost2 = pl.CostEstimate(
        flops=flops_mm + 4 * M2p * Cout2,
        transcendentals=0,
        bytes_accessed=4 * (M2p * Cin2 + Cin2 * Cout2 + 3 * Cout2 + M2p * Cout2),
    )
    y2 = pl.pallas_call(
        _fused_deconv_bn_kernel,
        out_shape=jax.ShapeDtypeStruct((M2p, Cout2), jnp.float32),
        grid_spec=pltpu.PrefetchScalarGridSpec(
            num_scalar_prefetch=0,
            grid=(nblk,),
            in_specs=[
                pl.BlockSpec((tm2, Cin2), lambda i: (i, 0)),
                pl.BlockSpec((Cin2, Cout2), lambda i: (0, 0)),
                pl.BlockSpec((1, Cout2), lambda i: (0, 0)),
                pl.BlockSpec((1, Cout2), lambda i: (0, 0)),
                pl.BlockSpec((1, Cout2), lambda i: (0, 0)),
            ],
            out_specs=pl.BlockSpec((tm2, Cout2), lambda i: (i, 0)),
        ),
        compiler_params=pltpu.CompilerParams(
            dimension_semantics=("parallel",),
            vmem_limit_bytes=vmem_limit_bytes),
        cost_estimate=cost2,
    )(x2, wblk, b2, scale2, shift2)

    # back to NCHW output: (M2p, r*C4) -> (M, C4) (same row-major memory) -> (N, Co, 2H, 2W)
    y_flat = y2[:M2].reshape(M, C4)
    out = y_flat.reshape(N, H, W, 2, 2, Co).transpose(0, 5, 1, 3, 2, 4)
    return out.reshape(N, Co, 2 * H, 2 * W)


def ref_forward(x, wt, b, gamma, beta, eps=1e-5):
    """Pure-JAX reference of ConvTranspose2d(k=2,s=2) + ReLU + train-mode BatchNorm2d."""
    N, Ci, H, W = x.shape
    Co = wt.shape[1]
    y = jnp.einsum('nchw,cokl->nohkwl', x, wt).reshape(N, Co, 2 * H, 2 * W)
    y = y + b[None, :, None, None]
    y = jnp.maximum(y, 0.0)
    mean = y.mean(axis=(0, 2, 3), keepdims=True)
    var = ((y - mean) ** 2).mean(axis=(0, 2, 3), keepdims=True)
    yn = (y - mean) / jnp.sqrt(var + eps)
    return yn * gamma[None, :, None, None] + beta[None, :, None, None]


if __name__ == "__main__":
    # Small shapes consistent with deConv(in_dim=4, out_dim=8, kernel_size=2, stride=2)
    N, Ci, H, W = 2, 4, 16, 16
    Co = 8

    key = jax.random.PRNGKey(0)
    kx, kw, kb = jax.random.split(key, 3)
    x = jax.random.normal(kx, (N, Ci, H, W), dtype=jnp.float32)
    # ConvTranspose2d weight layout: (in_dim, out_dim, kH, kW)
    wt = jax.random.normal(kw, (Ci, Co, 2, 2), dtype=jnp.float32) * 0.25
    b = jax.random.normal(kb, (Co,), dtype=jnp.float32) * 0.1
    # BatchNorm2d default affine init
    gamma = jnp.ones((Co,), dtype=jnp.float32)
    beta = jnp.zeros((Co,), dtype=jnp.float32)

    out = deconv_forward(x, wt, b, gamma, beta)
    out = jax.block_until_ready(out)

    ref = ref_forward(x, wt, b, gamma, beta)
    np.testing.assert_allclose(np.asarray(out), np.asarray(ref), rtol=1e-4, atol=1e-4)
    assert out.shape == (N, Co, 2 * H, 2 * W)

    print("KERNEL_OK")
</pallas_src>

<mosaic_0001>
module attributes {stable_mosaic.version = 11 : i64} {
  func.func @kernel(%arg0: i32, %arg1: memref<128x16xf32, #tpu.memory_space<vmem>>, %arg2: memref<16x128xf32, #tpu.memory_space<vmem>>, %arg3: memref<1x128xf32, #tpu.memory_space<vmem>>, %arg4: memref<1x1x128xf32, #tpu.memory_space<vmem>>, %arg5: memref<1x1x128xf32, #tpu.memory_space<vmem>>) attributes {dimension_semantics = [#tpu.dimension_semantics<parallel>], iteration_bounds = array<i64: 1>, scalar_prefetch = 0 : i64, scratch_operands = 0 : i64, tpu.core_type = #tpu.core_type<tc>, window_params = [{transform_indices = @transform_0, window_bounds = array<i64: 128, 16>}, {pipeline_mode = #tpu.pipeline_mode<synchronous>, transform_indices = @transform_1, window_bounds = array<i64: 16, 128>}, {pipeline_mode = #tpu.pipeline_mode<synchronous>, transform_indices = @transform_2, window_bounds = array<i64: 1, 128>}, {transform_indices = @transform_3, window_bounds = array<i64: 1, 1, 128>}, {transform_indices = @transform_4, window_bounds = array<i64: 1, 1, 128>}]} {
    %c0 = arith.constant 0 : index
    %c0_0 = arith.constant 0 : index
    %0 = vector.load %arg1[%c0, %c0_0] : memref<128x16xf32, #tpu.memory_space<vmem>>, vector<128x16xf32>
    %c0_1 = arith.constant 0 : index
    %c0_2 = arith.constant 0 : index
    %1 = vector.load %arg2[%c0_1, %c0_2] : memref<16x128xf32, #tpu.memory_space<vmem>>, vector<16x128xf32>
    %cst = arith.constant dense<0.000000e+00> : vector<128x128xf32>
    %2 = tpu.matmul %0, %1, %cst {dimension_numbers = #tpu.dot_dimension_numbers<[1], [0], [0], [1], [0, 0, 1, 1], [], []>} : vector<128x16xf32>, vector<16x128xf32>, vector<128x128xf32> -> vector<128x128xf32>
    %c0_3 = arith.constant 0 : index
    %c0_4 = arith.constant 0 : index
    %3 = vector.load %arg3[%c0_3, %c0_4] : memref<1x128xf32, #tpu.memory_space<vmem>>, vector<1x128xf32>
    %4 = vector.broadcast %3 : vector<1x128xf32> to vector<128x128xf32>
    %5 = arith.addf %2, %4 : vector<128x128xf32>
    %cst_5 = arith.constant 0.000000e+00 : f32
    %6 = vector.broadcast %cst_5 : f32 to vector<128x128xf32>
    %7 = arith.maximumf %5, %6 : vector<128x128xf32>
    %cst_6 = arith.constant dense<0.000000e+00> : vector<128xf32>
    %8 = vector.multi_reduction <add>, %7, %cst_6 [0] : vector<128x128xf32> to vector<128xf32>
    %9 = vector.shape_cast %8 : vector<128xf32> to vector<1x128xf32>
    %10 = vector.shape_cast %9 : vector<1x128xf32> to vector<1x1x128xf32>
    %c0_7 = arith.constant 0 : index
    %c0_8 = arith.constant 0 : index
    %c0_9 = arith.constant 0 : index
    %11 = vector.load %arg4[%c0_7, %c0_8, %c0_9] : memref<1x1x128xf32, #tpu.memory_space<vmem>>, vector<1x1x128xf32>
    tpu.vector_store %arg4[%c0_7, %c0_8, %c0_9], %10 {strides = array<i32>} : memref<1x1x128xf32, #tpu.memory_space<vmem>>, vector<1x1x128xf32>,
    %12 = arith.mulf %7, %7 : vector<128x128xf32>
    %cst_10 = arith.constant dense<0.000000e+00> : vector<128xf32>
    %13 = vector.multi_reduction <add>, %12, %cst_10 [0] : vector<128x128xf32> to vector<128xf32>
    %14 = vector.shape_cast %13 : vector<128xf32> to vector<1x128xf32>
    %15 = vector.shape_cast %14 : vector<1x128xf32> to vector<1x1x128xf32>
    %c0_11 = arith.constant 0 : index
    %c0_12 = arith.constant 0 : index
    %c0_13 = arith.constant 0 : index
    %16 = vector.load %arg5[%c0_11, %c0_12, %c0_13] : memref<1x1x128xf32, #tpu.memory_space<vmem>>, vector<1x1x128xf32>
    tpu.vector_store %arg5[%c0_11, %c0_12, %c0_13], %15 {strides = array<i32>} : memref<1x1x128xf32, #tpu.memory_space<vmem>>, vector<1x1x128xf32>,
    return
  }
  func.func @transform_0(%arg0: i32) -> (i32, i32) {
    %c0_i32 = arith.constant 0 : i32
    %c0_i32_0 = arith.constant 0 : i32
    return %arg0, %c0_i32 : i32, i32
  }
  func.func @transform_1(%arg0: i32) -> (i32, i32) {
    %c0_i32 = arith.constant 0 : i32
    %c0_i32_0 = arith.constant 0 : i32
    %c0_i32_1 = arith.constant 0 : i32
    return %c0_i32, %c0_i32_0 : i32, i32
  }
  func.func @transform_2(%arg0: i32) -> (i32, i32) {
    %c0_i32 = arith.constant 0 : i32
    %c0_i32_0 = arith.constant 0 : i32
    %c0_i32_1 = arith.constant 0 : i32
    return %c0_i32, %c0_i32_0 : i32, i32
  }
  func.func @transform_3(%arg0: i32) -> (i32, i32, i32) {
    %c0_i32 = arith.constant 0 : i32
    %c0_i32_0 = arith.constant 0 : i32
    %c0_i32_1 = arith.constant 0 : i32
    return %arg0, %c0_i32, %c0_i32_0 : i32, i32, i32
  }
  func.func @transform_4(%arg0: i32) -> (i32, i32, i32) {
    %c0_i32 = arith.constant 0 : i32
    %c0_i32_0 = arith.constant 0 : i32
    %c0_i32_1 = arith.constant 0 : i32
    return %arg0, %c0_i32, %c0_i32_0 : i32, i32, i32
  }
}

</mosaic_0001>

<bundles_post_ra>
// kernel: tpu_custom_call.1
= control target key start
LH: loop header
LB: loop body
LE: loop exit
PB: predicated region body
PF: predicated region fallthrough
CT: control target
= control target key end

     0   :  { %10 = vsyncpa [#allocation3], 0  ;;  %vm40_vm0 = vcmask 130048   ;;  %s463_s0 = inlined_call_operand.vmem [shape: f32[128,16], index: 0, kind: input, shape index: {}]   ;;  %s464_s1 = inlined_call_operand.vmem [shape: f32[16,128], index: 1, kind: input, shape index: {}]   ;;  %s465_s2 = inlined_call_operand.vmem [shape: f32[1,128], index: 2, kind: input, shape index: {}]   ;;  %s466_s3 = inlined_call_operand.hbm [shape: f32[1,1,128], index: 3, kind: output, shape index: {0}]   ;;  %s467_s4 = inlined_call_operand.hbm [shape: f32[1,1,128], index: 4, kind: output, shape index: {1}]  }
   0x1   :  { %v35_v0 = vld [vmem:[%s464_s1 + $0x8] sm:$0xff]  ;;  %v34_v1 = vld [vmem:[%s464_s1] sm:$0xff] }
   0x2   :  { %103 = vmatpush.msra.mxu0 %v35_v0  ;;  %v18_v2 = vld [vmem:[%s463_s0] sm:$0xff]  ;;  %278 = vmatpush.msra.mxu1 %v35_v0 }
   0x3   :  { %v22_v3 = vld [vmem:[%s463_s0 + $0x20] sm:$0xff]  ;;  %279 = vmatpush.msra.mxu2 %v35_v0  ;;  %280 = vmatpush.msra.mxu3 %v35_v0 }
   0x4   :  { %104 = vmatpush.msra.mxu0 %v34_v1  ;;  %281 = vmatpush.msra.mxu1 %v34_v1  ;;  %v26_v4 = vld [vmem:[%s463_s0 + $0x40] sm:$0xff] }
   0x5   :  { %v30_v5 = vld [vmem:[%s463_s0 + $0x60] sm:$0xff]  ;;  %262 = vmatmul.msk.f32.vlgmr.msra.gmra.mxu0 %vm40_vm0, %v18_v2  ;;  %266 = vmatmul.msk.f32.vlgmr.msra.gmra.mxu1 %vm40_vm0, %v22_v3 }
   0x6   :  { %282 = vmatpush.msra.mxu2 %v34_v1  ;;  %283 = vmatpush.msra.mxu3 %v34_v1 }
   0x7   :  { %270 = vmatmul.msk.f32.vlgmr.msra.gmra.mxu2 %vm40_vm0, %v26_v4  ;;  %274 = vmatmul.msk.f32.vlgmr.msra.gmra.mxu3 %vm40_vm0, %v30_v5 }
   0x8   :  { %11 = vsyncpa [#allocation5], 0  ;;  %v19_v6 = vld [vmem:[%s463_s0 + $0x8] sm:$0xff]  ;;  %v20_v10 = vld [vmem:[%s463_s0 + $0x10] sm:$0xff]  ;;  %s237_s27 = sshll.u32 %s466_s3, 4  ;;  %s340_s28 = smov [#allocation4]   ;;  %s238_s27 = int_to_ptr.hbm [resolvable:$true] %s237_s27 }
   0x9   :  { %v23_v7 = vld [vmem:[%s463_s0 + $0x28] sm:$0xff]  ;;  %v24_v11 = vld [vmem:[%s463_s0 + $0x30] sm:$0xff]  ;;  %v21_v14 = vld [vmem:[%s463_s0 + $0x18] sm:$0xff]  ;;  %s246_s29 = sshll.u32 %s340_s28, 4  ;;  %s248_s6 = sshll.u32 %s467_s4, 4  ;;  %s247_s29 = int_to_ptr.vmem [resolvable:$true] %s246_s29  ;;  %s249_s6 = int_to_ptr.hbm [resolvable:$true] %s248_s6 }
   0xa   :  { %v27_v8 = vld [vmem:[%s463_s0 + $0x48] sm:$0xff]  ;;  %v28_v12 = vld [vmem:[%s463_s0 + $0x50] sm:$0xff]  ;;  %v25_v15 = vld [vmem:[%s463_s0 + $0x38] sm:$0xff] }
   0xb   :  { %v31_v9 = vld [vmem:[%s463_s0 + $0x68] sm:$0xff]  ;;  %v32_v13 = vld [vmem:[%s463_s0 + $0x70] sm:$0xff]  ;;  %v29_v16 = vld [vmem:[%s463_s0 + $0x58] sm:$0xff] }
   0xc   :  { %v33_v17 = vld [vmem:[%s463_s0 + $0x78] sm:$0xff]  ;;  %v439_v24 = vld [vmem:[%s465_s2] ss:$0 sm:$0xff]  ;;  %s339_s0 = smov [#allocation2]  }
   0xd   :  { %263 = vmatmul.msk.f32.gmra.mxu0 %vm40_vm0, %v19_v6  ;;  %267 = vmatmul.msk.f32.gmra.mxu1 %vm40_vm0, %v23_v7  ;;  %s235_s2 = sshll.u32 %s339_s0, 4  ;;  %s236_s2 = int_to_ptr.vmem [resolvable:$true] %s235_s2 }
   0xf   :  { %271 = vmatmul.msk.f32.gmra.mxu2 %vm40_vm0, %v27_v8  ;;  %275 = vmatmul.msk.f32.gmra.mxu3 %vm40_vm0, %v31_v9 }
  0x15   :  { %264 = vmatmul.msk.f32.gmra.mxu0 %vm40_vm0, %v20_v10  ;;  %268 = vmatmul.msk.f32.gmra.mxu1 %vm40_vm0, %v24_v11 }
  0x17   :  { %272 = vmatmul.msk.f32.gmra.mxu2 %vm40_vm0, %v28_v12  ;;  %276 = vmatmul.msk.f32.gmra.mxu3 %vm40_vm0, %v32_v13 }
  0x1d   :  { %265 = vmatmul.msk.f32.gmra.mxu0 %vm40_vm0, %v21_v14  ;;  %269 = vmatmul.msk.f32.gmra.mxu1 %vm40_vm0, %v25_v15 }
  0x1f   :  { %273 = vmatmul.msk.f32.gmra.mxu2 %vm40_vm0, %v29_v16  ;;  %277 = vmatmul.msk.f32.gmra.mxu3 %vm40_vm0, %v33_v17 }
  0x82   :  { %v106_v18 = vpop.f32.mrf.mxu0  ;;  %v118_v19 = vpop.f32.mrf.mxu1 }
  0x83   :  { %v107_v26 = vadd.f32 %v439_v24, %v106_v18  ;;  %v119_v35 = vadd.f32 %v439_v24, %v118_v19 }
  0x85   :  { %v154_v32 = vmax.f32 %v107_v26, 0.0  ;;  %v158_v45 = vmax.f32 %v119_v35, 0.0 }
  0x87   :  { %v192_v37 = vmul.f32 %v154_v32, %v154_v32  ;;  %v196_v58 = vmul.f32 %v158_v45, %v158_v45 }
  0x8a   :  { %v109_v20 = vpop.f32.mrf.mxu0  ;;  %v121_v21 = vpop.f32.mrf.mxu1 }
  0x8b   :  { %v130_v22 = vpop.f32.mrf.mxu2  ;;  %v142_v23 = vpop.f32.mrf.mxu3  ;;  %v110_v25 = vadd.f32 %v439_v24, %v109_v20  ;;  %v122_v42 = vadd.f32 %v439_v24, %v121_v21 }
  0x8c   :  { %v131_v55 = vadd.f32 %v439_v24, %v130_v22  ;;  %v143_v13 = vadd.f32 %v439_v24, %v142_v23 }
  0x8d   :  { %v155_v31 = vmax.f32 %v110_v25, 0.0  ;;  %v159_v52 = vmax.f32 %v122_v42, 0.0 }
  0x8e   :  { %v162_v3 = vmax.f32 %v131_v55, 0.0  ;;  %v166_v26 = vmax.f32 %v143_v13, 0.0 }
  0x8f   :  { %v193_v36 = vmul.f32 %v155_v31, %v155_v31  ;;  %v170_v40 = vadd.f32 %v155_v31, %v154_v32  ;;  %v197_v62 = vmul.f32 %v159_v52, %v159_v52 }
  0x90   :  { %v200_v15 = vmul.f32 %v162_v3, %v162_v3 }
  0x91   :  { %v208_v47 = vadd.f32 %v193_v36, %v192_v37  ;;  %v204_v36 = vmul.f32 %v166_v26, %v166_v26 }
  0x92   :  { %v112_v27 = vpop.f32.mrf.mxu0  ;;  %v124_v28 = vpop.f32.mrf.mxu1 }
  0x93   :  { %v113_v29 = vadd.f32 %v439_v24, %v112_v27  ;;  %v133_v30 = vpop.f32.mrf.mxu2  ;;  %v145_v33 = vpop.f32.mrf.mxu3  ;;  %v125_v46 = vadd.f32 %v439_v24, %v124_v28 }
  0x94   :  { %v134_v1 = vadd.f32 %v439_v24, %v133_v30  ;;  %v146_v25 = vadd.f32 %v439_v24, %v145_v33 }
  0x95   :  { %v156_v34 = vmax.f32 %v113_v29, 0.0  ;;  %v160_v56 = vmax.f32 %v125_v46, 0.0 }
  0x96   :  { %v163_v11 = vmax.f32 %v134_v1, 0.0 }
  0x97   :  { %v194_v41 = vmul.f32 %v156_v34, %v156_v34  ;;  %v171_v48 = vadd.f32 %v170_v40, %v156_v34  ;;  %v198_v4 = vmul.f32 %v160_v56, %v160_v56  ;;  %v167_v34 = vmax.f32 %v146_v25, 0.0 }
  0x98   :  { %v201_v20 = vmul.f32 %v163_v11, %v163_v11 }
  0x99   :  { %v209_v51 = vadd.f32 %v208_v47, %v194_v41  ;;  %v205_v41 = vmul.f32 %v167_v34, %v167_v34 }
  0x9a   :  { %v115_v38 = vpop.f32.mrf.mxu0  ;;  %v127_v39 = vpop.f32.mrf.mxu1 }
  0x9b   :  { %v116_v43 = vadd.f32 %v439_v24, %v115_v38  ;;  %v136_v44 = vpop.f32.mrf.mxu2  ;;  %v128_v50 = vadd.f32 %v439_v24, %v127_v39  ;;  %v148_v57 = vpop.f32.mrf.mxu3 }
  0x9c   :  { %v137_v5 = vadd.f32 %v439_v24, %v136_v44  ;;  %v149_v28 = vadd.f32 %v439_v24, %v148_v57 }
  0x9d   :  { %v157_v49 = vmax.f32 %v116_v43, 0.0  ;;  %v161_v61 = vmax.f32 %v128_v50, 0.0 }
  0x9e   :  { %v164_v14 = vmax.f32 %v137_v5, 0.0  ;;  %v168_v39 = vmax.f32 %v149_v28, 0.0 }
  0x9f   :  { %v172_v53 = vadd.f32 %v171_v48, %v157_v49  ;;  %v195_v54 = vmul.f32 %v157_v49, %v157_v49  ;;  %v199_v8 = vmul.f32 %v161_v61, %v161_v61 }
  0xa0   :  { %v202_v27 = vmul.f32 %v164_v14, %v164_v14  ;;  %v206_v44 = vmul.f32 %v168_v39, %v168_v39 }
  0xa1   :  { %v173_v59 = vadd.f32 %v172_v53, %v158_v45  ;;  %v210_v60 = vadd.f32 %v209_v51, %v195_v54 }
  0xa3   :  { %v211_v63 = vadd.f32 %v210_v60, %v196_v58  ;;  %v174_v0 = vadd.f32 %v173_v59, %v159_v52  ;;  %v139_v2 = vpop.f32.mrf.mxu2  ;;  %v151_v19 = vpop.f32.mrf.mxu3 }
  0xa4   :  { %v140_v9 = vadd.f32 %v439_v24, %v139_v2  ;;  %v152_v23 = vadd.f32 %v439_v24, %v151_v19 }
  0xa5   :  { %v175_v6 = vadd.f32 %v174_v0, %v160_v56  ;;  %v212_v7 = vadd.f32 %v211_v63, %v197_v62 }
  0xa6   :  { %v165_v18 = vmax.f32 %v140_v9, 0.0  ;;  %v169_v40 = vmax.f32 %v152_v23, 0.0 }
  0xa7   :  { %v213_v10 = vadd.f32 %v212_v7, %v198_v4  ;;  %v176_v12 = vadd.f32 %v175_v6, %v161_v61 }
  0xa8   :  { %v203_v31 = vmul.f32 %v165_v18, %v165_v18  ;;  %v207_v46 = vmul.f32 %v169_v40, %v169_v40 }
  0xa9   :  { %v177_v16 = vadd.f32 %v176_v12, %v162_v3  ;;  %v214_v17 = vadd.f32 %v213_v10, %v199_v8 }
  0xab   :  { %v215_v21 = vadd.f32 %v214_v17, %v200_v15  ;;  %v178_v22 = vadd.f32 %v177_v16, %v163_v11 }
  0xad   :  { %v179_v29 = vadd.f32 %v178_v22, %v164_v14  ;;  %v216_v30 = vadd.f32 %v215_v21, %v201_v20 }
  0xaf   :  { %v217_v32 = vadd.f32 %v216_v30, %v202_v27  ;;  %v180_v35 = vadd.f32 %v179_v29, %v165_v18 }
  0xb1   :  { %v181_v37 = vadd.f32 %v180_v35, %v166_v26  ;;  %v218_v38 = vadd.f32 %v217_v32, %v203_v31 }
  0xb3   :  { %v219_v42 = vadd.f32 %v218_v38, %v204_v36  ;;  %v182_v33 = vadd.f32 %v181_v37, %v167_v34 }
  0xb5   :  { %v183_v43 = vadd.f32 %v182_v33, %v168_v39  ;;  %v220_v45 = vadd.f32 %v219_v42, %v205_v41 }
  0xb7   :  { %v221_v47 = vadd.f32 %v220_v45, %v206_v44  ;;  %v184_v48 = vadd.f32 %v183_v43, %v169_v40 }
  0xb9   :  { %v185_v49 = vrot.slane %v184_v48, 4  ;;  %v222_v50 = vadd.f32 %v221_v47, %v207_v46 }
  0xbb   :  { %v186_v24 = vadd.f32 %v185_v49, %v184_v48  ;;  %v223_v51 = vrot.slane %v222_v50, 4 }
  0xbd   :  { %v224_v52 = vadd.f32 %v223_v51, %v222_v50  ;;  %v187_v53 = vrot.slane %v186_v24, 2 }
  0xbf   :  { %v188_v54 = vadd.f32 %v187_v53, %v186_v24  ;;  %v225_v55 = vrot.slane %v224_v52, 2 }
  0xc1   :  { %v189_v56 = vrot.slane %v188_v54, 1  ;;  %v226_v57 = vadd.f32 %v225_v55, %v224_v52 }
  0xc3   :  { %v190_v58 = vadd.f32 %v189_v56, %v188_v54  ;;  %v227_v59 = vrot.slane %v226_v57, 1 }
  0xc5   :  { %191 = vst [vmem:[#allocation2] sm:$0x1] %v190_v58  ;;  %v228_v60 = vadd.f32 %v227_v59, %v226_v57 }
  0xc6   :  { %240 = dma.vmem_to_hbm [thread:$0]  %s236_s2, 16, %s238_s27, [#allocation3]  }
  0xc7   :  { %229 = vst [vmem:[#allocation4] sm:$0x1] %v228_v60 }
  0xc8   :  { %251 = dma.vmem_to_hbm [thread:$0]  %s247_s29, 16, %s249_s6, [#allocation5]  }
  0xc9   :  { %335 = dma.done.wait [#allocation3], 16  }
  0xca   :  { %336 = vsyncadd [#allocation3], 4294967280 }
  0xcb   :  { %337 = dma.done.wait [#allocation5], 16  }
  0xcc   :  { %338 = vsyncadd [#allocation5], 4294967280 }
  0xcd   :  { %260 = vsyncpa [#allocation3], 1 }
  0xce   :  { %261 = vsyncpa [#allocation5], 1 }

</bundles_post_ra>
